<compile_context>
chip_gen: v6e
topology: v6e:2x2x1
jax: 0.10.0
libtpu: 0.0.40
codegen_flags: <defaults>
</compile_context>

<pallas_src>
import jax
import jax.numpy as jnp
from jax.experimental import pallas as pl
from jax.experimental.pallas import tpu as pltpu


def action_encoder_kernel(s_ref, a_ref, w1s_ref, w1a_ref, b1_ref,
                          w2_ref, b2_ref, w3_ref, b3_ref, out_ref):
    """One state-tile of TB states x all A actions, fully resident in VMEM."""
    cdt = w2_ref.dtype                      # compute dtype (bf16 or f32)
    tb = s_ref.shape[0]
    A = a_ref.shape[0]
    H1 = w1s_ref.shape[1]

    s = s_ref[...].astype(cdt)              # [tb, n_dim]
    a = a_ref[...].astype(cdt)              # [A, n_actions]

    # Layer 1, decomposed over the (state, action) cross-product:
    #   h1[b, a, :] = relu(s[b] @ W1_s + a[a] @ W1_a + b1)
    sW = jnp.dot(s, w1s_ref[...], preferred_element_type=jnp.float32)   # [tb, H1] f32
    aW = jnp.dot(a, w1a_ref[...], preferred_element_type=jnp.float32)   # [A,  H1] f32
    h1 = sW[:, None, :] + aW[None, :, :] + b1_ref[...]                  # [tb, A, H1] f32
    h1 = jnp.maximum(h1, 0.0).reshape(tb * A, H1).astype(cdt)

    # Layer 2 (MXU, f32 accumulate; bias/ReLU stay in f32 for v5e VPU).
    h2 = jnp.dot(h1, w2_ref[...], preferred_element_type=jnp.float32) + b2_ref[...]
    h2 = jnp.maximum(h2, 0.0).astype(cdt)

    # Layer 3 into a lane-dense (128-wide, zero-padded) output tile.
    zt = jnp.dot(h2, w3_ref[...], preferred_element_type=jnp.float32) + b3_ref[...]
    out_ref[...] = zt.astype(out_ref.dtype)


def init_action_encoder_params(key, n_dim, n_actions, hidden_dim1=128, hidden_dim2=128):
    """nn.Linear-style init (U[-1/sqrt(fan_in), 1/sqrt(fan_in)]).
    Weights stored as [in, out] (transpose of PyTorch's [out, in]); biases as [1, out]."""
    ks = jax.random.split(key, 6)

    def lin(kw, kb, fan_in, fan_out):
        bound = 1.0 / jnp.sqrt(fan_in)
        w = jax.random.uniform(kw, (fan_in, fan_out), jnp.float32, -bound, bound)
        b = jax.random.uniform(kb, (1, fan_out), jnp.float32, -bound, bound)
        return w, b

    w1, b1 = lin(ks[0], ks[1], n_dim + n_actions, hidden_dim1)
    w2, b2 = lin(ks[2], ks[3], hidden_dim1, hidden_dim2)
    w3, b3 = lin(ks[4], ks[5], hidden_dim2, n_dim)
    return (w1, b1, w2, b2, w3, b3)


def _choose_state_tile(B, A, target_rows):
    """Tile size over states; keeps ~target_rows (<= ~1-2 MiB activations) per grid step.
    When tiling (tb < B) the tile must be sublane-aligned (multiple of 8)."""
    tb = min(B, max(1, target_rows // max(A, 1)))
    if tb >= B:
        return B
    tb = (tb // 8) * 8
    return tb if tb >= 8 else B


def action_encoder_forward(abstract_states, actions, params, *,
                           compute_dtype=jnp.bfloat16, target_rows=1024):
    """abstract_states: [B, n_dim], actions: [A, n_actions] -> [B, A, n_dim]."""
    B, n_dim = abstract_states.shape
    A, n_actions = actions.shape
    w1, b1, w2, b2, w3, b3 = params
    H1 = w1.shape[1]
    H2 = w2.shape[1]
    D_out = w3.shape[1]
    cdt = compute_dtype

    # Split W1 across the (state, action) concat so the kernel fuses the cross-product.
    w1s = w1[:n_dim].astype(cdt)
    w1a = w1[n_dim:].astype(cdt)
    w2c = w2.astype(cdt)
    # Zero-pad layer 3 to a lane-dense output width (multiple of 128); slice after.
    D_pad = 128 * pl.cdiv(D_out, 128)
    w3p = jnp.zeros((H2, D_pad), cdt).at[:, :D_out].set(w3.astype(cdt))
    b3p = jnp.zeros((1, D_pad), jnp.float32).at[:, :D_out].set(b3.astype(jnp.float32))
    b1f = b1.astype(jnp.float32)
    b2f = b2.astype(jnp.float32)

    tb = _choose_state_tile(B, A, target_rows)
    nb = pl.cdiv(B, tb)
    M = B * A

    # Per-step VMEM (f32 activations, cdt weights):
    #   ~tb*A*(H1+H2+D_pad)*4 B + weights (~80 KiB bf16) -> ~1.6 MiB at tb*A=1024,
    # comfortably inside v7x's 32 MiB default scoped VMEM even with double buffering.
    out = pl.pallas_call(
        action_encoder_kernel,
        out_shape=jax.ShapeDtypeStruct((M, D_pad), jnp.float32),
        grid_spec=pl.GridSpec(
            grid=(nb,),
            in_specs=[
                pl.BlockSpec((tb, n_dim), lambda i: (i, 0)),       # state tile (pipelined)
                pl.BlockSpec((A, n_actions), lambda i: (0, 0)),    # all actions (resident)
                pl.BlockSpec((n_dim, H1), lambda i: (0, 0)),       # W1_s
                pl.BlockSpec((n_actions, H1), lambda i: (0, 0)),   # W1_a
                pl.BlockSpec((1, H1), lambda i: (0, 0)),           # b1
                pl.BlockSpec((H1, H2), lambda i: (0, 0)),          # W2
                pl.BlockSpec((1, H2), lambda i: (0, 0)),           # b2
                pl.BlockSpec((H2, D_pad), lambda i: (0, 0)),       # W3 (padded)
                pl.BlockSpec((1, D_pad), lambda i: (0, 0)),        # b3 (padded)
            ],
            out_specs=pl.BlockSpec((tb * A, D_pad), lambda i: (i, 0)),
        ),
        compiler_params=pltpu.CompilerParams(
            dimension_semantics=("parallel",),   # independent state tiles; megacore on v7x
        ),
    )(abstract_states, actions, w1s, w1a, b1f, w2c, b2f, w3p, b3p)

    return out[:, :D_out].reshape(B, A, D_out)


def reference_forward(abstract_states, actions, params, *, compute_dtype=jnp.float32):
    """Pure-JAX reference of the PyTorch forward, mirroring the kernel's dtype policy."""
    w1, b1, w2, b2, w3, b3 = params
    cdt = compute_dtype
    B = abstract_states.shape[0]
    A = actions.shape[0]
    s = jnp.broadcast_to(abstract_states[:, None, :], (B, A, abstract_states.shape[1]))
    a = jnp.broadcast_to(actions[None, :, :], (B, A, actions.shape[1]))
    za = jnp.concatenate([s, a], axis=-1).astype(cdt)
    h1 = jnp.maximum(
        jnp.dot(za, w1.astype(cdt), preferred_element_type=jnp.float32) + b1, 0.0)
    h2 = jnp.maximum(
        jnp.dot(h1.astype(cdt), w2.astype(cdt), preferred_element_type=jnp.float32) + b2, 0.0)
    return jnp.dot(h2.astype(cdt), w3.astype(cdt), preferred_element_type=jnp.float32) + b3


if __name__ == "__main__":
    # Small shapes consistent with the module: B states of dim n_dim, A action vectors.
    B, A = 2, 8
    n_dim, n_actions = 32, 8
    hidden1, hidden2 = 128, 128

    key = jax.random.PRNGKey(0)
    k_params, k_states, k_actions = jax.random.split(key, 3)

    params = init_action_encoder_params(k_params, n_dim, n_actions, hidden1, hidden2)
    abstract_states = jax.random.normal(k_states, (B, n_dim), dtype=jnp.float32)
    actions = jax.random.normal(k_actions, (A, n_actions), dtype=jnp.float32)

    # Strict correctness check in f32 (exact PyTorch-equivalent math).
    zt32 = action_encoder_forward(abstract_states, actions, params,
                                  compute_dtype=jnp.float32)
    zt32 = jax.block_until_ready(zt32)
    ref32 = reference_forward(abstract_states, actions, params, compute_dtype=jnp.float32)
    assert zt32.shape == (B, A, n_dim), zt32.shape
    assert jnp.allclose(zt32, ref32, atol=1e-5, rtol=1e-5), "f32 mismatch vs reference"

    # bf16 fast path (v6e/v7x MXU) with f32 accumulation; reference mirrors the casts.
    zt16 = action_encoder_forward(abstract_states, actions, params,
                                  compute_dtype=jnp.bfloat16)
    zt16 = jax.block_until_ready(zt16)
    ref16 = reference_forward(abstract_states, actions, params, compute_dtype=jnp.bfloat16)
    assert zt16.shape == (B, A, n_dim), zt16.shape
    assert jnp.allclose(zt16, ref16, atol=2e-2, rtol=2e-2), "bf16 mismatch vs reference"

    print("KERNEL_OK")
</pallas_src>

<mosaic_0001>
module attributes {stable_mosaic.version = 11 : i64} {
  func.func @action_encoder_kernel(%arg0: i32, %arg1: memref<2x32xf32, #tpu.memory_space<vmem>>, %arg2: memref<8x8xf32, #tpu.memory_space<vmem>>, %arg3: memref<32x128xf32, #tpu.memory_space<vmem>>, %arg4: memref<8x128xf32, #tpu.memory_space<vmem>>, %arg5: memref<1x128xf32, #tpu.memory_space<vmem>>, %arg6: memref<128x128xf32, #tpu.memory_space<vmem>>, %arg7: memref<1x128xf32, #tpu.memory_space<vmem>>, %arg8: memref<128x128xf32, #tpu.memory_space<vmem>>, %arg9: memref<1x128xf32, #tpu.memory_space<vmem>>, %arg10: memref<16x128xf32, #tpu.memory_space<vmem>>) attributes {dimension_semantics = [#tpu.dimension_semantics<parallel>], iteration_bounds = array<i64: 1>, scalar_prefetch = 0 : i64, scratch_operands = 0 : i64, tpu.core_type = #tpu.core_type<tc>, window_params = [{transform_indices = @transform_0, window_bounds = array<i64: 2, 32>}, {pipeline_mode = #tpu.pipeline_mode<synchronous>, transform_indices = @transform_1, window_bounds = array<i64: 8, 8>}, {pipeline_mode = #tpu.pipeline_mode<synchronous>, transform_indices = @transform_2, window_bounds = array<i64: 32, 128>}, {pipeline_mode = #tpu.pipeline_mode<synchronous>, transform_indices = @transform_3, window_bounds = array<i64: 8, 128>}, {pipeline_mode = #tpu.pipeline_mode<synchronous>, transform_indices = @transform_4, window_bounds = array<i64: 1, 128>}, {pipeline_mode = #tpu.pipeline_mode<synchronous>, transform_indices = @transform_5, window_bounds = array<i64: 128, 128>}, {pipeline_mode = #tpu.pipeline_mode<synchronous>, transform_indices = @transform_6, window_bounds = array<i64: 1, 128>}, {pipeline_mode = #tpu.pipeline_mode<synchronous>, transform_indices = @transform_7, window_bounds = array<i64: 128, 128>}, {pipeline_mode = #tpu.pipeline_mode<synchronous>, transform_indices = @transform_8, window_bounds = array<i64: 1, 128>}, {transform_indices = @transform_9, window_bounds = array<i64: 16, 128>}]} {
    %c0 = arith.constant 0 : index
    %c0_0 = arith.constant 0 : index
    %0 = vector.load %arg1[%c0, %c0_0] : memref<2x32xf32, #tpu.memory_space<vmem>>, vector<2x32xf32>
    %c0_1 = arith.constant 0 : index
    %c0_2 = arith.constant 0 : index
    %1 = vector.load %arg2[%c0_1, %c0_2] : memref<8x8xf32, #tpu.memory_space<vmem>>, vector<8x8xf32>
    %c0_3 = arith.constant 0 : index
    %c0_4 = arith.constant 0 : index
    %2 = vector.load %arg3[%c0_3, %c0_4] : memref<32x128xf32, #tpu.memory_space<vmem>>, vector<32x128xf32>
    %cst = arith.constant dense<0.000000e+00> : vector<2x128xf32>
    %3 = tpu.matmul %0, %2, %cst {dimension_numbers = #tpu.dot_dimension_numbers<[1], [0], [0], [1], [0, 0, 1, 1], [], []>} : vector<2x32xf32>, vector<32x128xf32>, vector<2x128xf32> -> vector<2x128xf32>
    %c0_5 = arith.constant 0 : index
    %c0_6 = arith.constant 0 : index
    %4 = vector.load %arg4[%c0_5, %c0_6] : memref<8x128xf32, #tpu.memory_space<vmem>>, vector<8x128xf32>
    %cst_7 = arith.constant dense<0.000000e+00> : vector<8x128xf32>
    %5 = tpu.matmul %1, %4, %cst_7 {dimension_numbers = #tpu.dot_dimension_numbers<[1], [0], [0], [1], [0, 0, 1, 1], [], []>} : vector<8x8xf32>, vector<8x128xf32>, vector<8x128xf32> -> vector<8x128xf32>
    %6 = vector.shape_cast %3 : vector<2x128xf32> to vector<2x1x128xf32>
    %7 = vector.shape_cast %5 : vector<8x128xf32> to vector<1x8x128xf32>
    %8 = vector.broadcast %6 : vector<2x1x128xf32> to vector<2x8x128xf32>
    %9 = vector.broadcast %7 : vector<1x8x128xf32> to vector<2x8x128xf32>
    %10 = arith.addf %8, %9 : vector<2x8x128xf32>
    %c0_8 = arith.constant 0 : index
    %c0_9 = arith.constant 0 : index
    %11 = vector.load %arg5[%c0_8, %c0_9] : memref<1x128xf32, #tpu.memory_space<vmem>>, vector<1x128xf32>
    %12 = vector.shape_cast %11 : vector<1x128xf32> to vector<1x1x128xf32>
    %13 = vector.broadcast %12 : vector<1x1x128xf32> to vector<2x8x128xf32>
    %14 = arith.addf %10, %13 : vector<2x8x128xf32>
    %cst_10 = arith.constant 0.000000e+00 : f32
    %15 = vector.broadcast %cst_10 : f32 to vector<2x8x128xf32>
    %16 = arith.maximumf %14, %15 : vector<2x8x128xf32>
    %17 = vector.shape_cast %16 : vector<2x8x128xf32> to vector<16x128xf32>
    %c0_11 = arith.constant 0 : index
    %c0_12 = arith.constant 0 : index
    %18 = vector.load %arg6[%c0_11, %c0_12] : memref<128x128xf32, #tpu.memory_space<vmem>>, vector<128x128xf32>
    %cst_13 = arith.constant dense<0.000000e+00> : vector<16x128xf32>
    %19 = tpu.matmul %17, %18, %cst_13 {dimension_numbers = #tpu.dot_dimension_numbers<[1], [0], [0], [1], [0, 0, 1, 1], [], []>} : vector<16x128xf32>, vector<128x128xf32>, vector<16x128xf32> -> vector<16x128xf32>
    %c0_14 = arith.constant 0 : index
    %c0_15 = arith.constant 0 : index
    %20 = vector.load %arg7[%c0_14, %c0_15] : memref<1x128xf32, #tpu.memory_space<vmem>>, vector<1x128xf32>
    %21 = vector.broadcast %20 : vector<1x128xf32> to vector<16x128xf32>
    %22 = arith.addf %19, %21 : vector<16x128xf32>
    %cst_16 = arith.constant 0.000000e+00 : f32
    %23 = vector.broadcast %cst_16 : f32 to vector<16x128xf32>
    %24 = arith.maximumf %22, %23 : vector<16x128xf32>
    %c0_17 = arith.constant 0 : index
    %c0_18 = arith.constant 0 : index
    %25 = vector.load %arg8[%c0_17, %c0_18] : memref<128x128xf32, #tpu.memory_space<vmem>>, vector<128x128xf32>
    %cst_19 = arith.constant dense<0.000000e+00> : vector<16x128xf32>
    %26 = tpu.matmul %24, %25, %cst_19 {dimension_numbers = #tpu.dot_dimension_numbers<[1], [0], [0], [1], [0, 0, 1, 1], [], []>} : vector<16x128xf32>, vector<128x128xf32>, vector<16x128xf32> -> vector<16x128xf32>
    %c0_20 = arith.constant 0 : index
    %c0_21 = arith.constant 0 : index
    %27 = vector.load %arg9[%c0_20, %c0_21] : memref<1x128xf32, #tpu.memory_space<vmem>>, vector<1x128xf32>
    %28 = vector.broadcast %27 : vector<1x128xf32> to vector<16x128xf32>
    %29 = arith.addf %26, %28 : vector<16x128xf32>
    %c0_22 = arith.constant 0 : index
    %c0_23 = arith.constant 0 : index
    %30 = vector.load %arg10[%c0_22, %c0_23] : memref<16x128xf32, #tpu.memory_space<vmem>>, vector<16x128xf32>
    tpu.vector_store %arg10[%c0_22, %c0_23], %29 {strides = array<i32>} : memref<16x128xf32, #tpu.memory_space<vmem>>, vector<16x128xf32>,
    return
  }
  func.func @transform_0(%arg0: i32) -> (i32, i32) {
    %c0_i32 = arith.constant 0 : i32
    %c0_i32_0 = arith.constant 0 : i32
    return %arg0, %c0_i32 : i32, i32
  }
  func.func @transform_1(%arg0: i32) -> (i32, i32) {
    %c0_i32 = arith.constant 0 : i32
    %c0_i32_0 = arith.constant 0 : i32
    %c0_i32_1 = arith.constant 0 : i32
    return %c0_i32, %c0_i32_0 : i32, i32
  }
  func.func @transform_2(%arg0: i32) -> (i32, i32) {
    %c0_i32 = arith.constant 0 : i32
    %c0_i32_0 = arith.constant 0 : i32
    %c0_i32_1 = arith.constant 0 : i32
    return %c0_i32, %c0_i32_0 : i32, i32
  }
  func.func @transform_3(%arg0: i32) -> (i32, i32) {
    %c0_i32 = arith.constant 0 : i32
    %c0_i32_0 = arith.constant 0 : i32
    %c0_i32_1 = arith.constant 0 : i32
    return %c0_i32, %c0_i32_0 : i32, i32
  }
  func.func @transform_4(%arg0: i32) -> (i32, i32) {
    %c0_i32 = arith.constant 0 : i32
    %c0_i32_0 = arith.constant 0 : i32
    %c0_i32_1 = arith.constant 0 : i32
    return %c0_i32, %c0_i32_0 : i32, i32
  }
  func.func @transform_5(%arg0: i32) -> (i32, i32) {
    %c0_i32 = arith.constant 0 : i32
    %c0_i32_0 = arith.constant 0 : i32
    %c0_i32_1 = arith.constant 0 : i32
    return %c0_i32, %c0_i32_0 : i32, i32
  }
  func.func @transform_6(%arg0: i32) -> (i32, i32) {
    %c0_i32 = arith.constant 0 : i32
    %c0_i32_0 = arith.constant 0 : i32
    %c0_i32_1 = arith.constant 0 : i32
    return %c0_i32, %c0_i32_0 : i32, i32
  }
  func.func @transform_7(%arg0: i32) -> (i32, i32) {
    %c0_i32 = arith.constant 0 : i32
    %c0_i32_0 = arith.constant 0 : i32
    %c0_i32_1 = arith.constant 0 : i32
    return %c0_i32, %c0_i32_0 : i32, i32
  }
  func.func @transform_8(%arg0: i32) -> (i32, i32) {
    %c0_i32 = arith.constant 0 : i32
    %c0_i32_0 = arith.constant 0 : i32
    %c0_i32_1 = arith.constant 0 : i32
    return %c0_i32, %c0_i32_0 : i32, i32
  }
  func.func @transform_9(%arg0: i32) -> (i32, i32) {
    %c0_i32 = arith.constant 0 : i32
    %c0_i32_0 = arith.constant 0 : i32
    return %arg0, %c0_i32 : i32, i32
  }
}

</mosaic_0001>

<bundles_post_ra>
// kernel: tpu_custom_call.1
= control target key start
LH: loop header
LB: loop body
LE: loop exit
PB: predicated region body
PF: predicated region fallthrough
CT: control target
= control target key end

     0   :  { %14 = vsyncpa [#allocation3], 0  ;;  %s930_s0 = inlined_call_operand.hbm [shape: f32[2,32], index: 0, kind: input, shape index: {}]   ;;  %s931_s1 = inlined_call_operand.hbm [shape: f32[8,8], index: 1, kind: input, shape index: {}]   ;;  %s932_s2 = inlined_call_operand.hbm [shape: f32[32,128], index: 2, kind: input, shape index: {}]   ;;  %s933_s3 = inlined_call_operand.hbm [shape: f32[8,128], index: 3, kind: input, shape index: {}]   ;;  %s934_s4 = inlined_call_operand.vmem [shape: f32[1,128], index: 4, kind: input, shape index: {}]   ;;  %s935_s5 = inlined_call_operand.hbm [shape: f32[128,128], index: 5, kind: input, shape index: {}]   ;;  %s936_s6 = inlined_call_operand.vmem [shape: f32[1,128], index: 6, kind: input, shape index: {}]   ;;  %s937_s7 = inlined_call_operand.hbm [shape: f32[128,128], index: 7, kind: input, shape index: {}]   ;;  %s938_s8 = inlined_call_operand.vmem [shape: f32[1,128], index: 8, kind: input, shape index: {}]   ;;  %s939_s9 = inlined_call_operand.hbm [shape: f32[16,128], index: 9, kind: output, shape index: {}]  }
   0x1   :  { %15 = vsyncpa [#allocation6], 0 }
   0x2   :  { %16 = vsyncpa [#allocation9], 0 }
   0x3   :  { %17 = vsyncpa [#allocation12], 0 }
   0x4   :  { %18 = vsyncpa [#allocation4], 0  ;;  %s826_s30 = smov [#allocation5]   ;;  %s827_s11 = smov [#allocation8]  }
   0x5   :  { %s35_s10 = sshll.u32 %s826_s30, 4  ;;  %s57_s12 = sshll.u32 %s827_s11, 4  ;;  %s36_s10 = int_to_ptr.vmem [resolvable:$true] %s35_s10  ;;  %s58_s12 = int_to_ptr.vmem [resolvable:$true] %s57_s12 }
   0x6   :  { %s684_s13 = scalar_lea.vmem %s36_s10, 128  ;;  %p689_p1 = scmp.lt.s32.totalorder %s36_s10, %s36_s10 }
   0x7   :  { %p685_p0 = scmp.ne.s32.totalorder %s36_s10, %s684_s13  ;;  %p690_p2 = scmp.lt.s32.totalorder %s684_s13, %s684_s13 }
   0x9   :  { %p691_p3 = por %p690_p2, %p689_p1 }
   0xb   :  { %p692_p4 = pnand %p691_p3, %p685_p0 }
   0xd   :  { %695 = shalt.err (!%p692_p4)
}
   0xe   :  { %38 = dma.hbm_to_vmem [thread:$0]  %s931_s1, 128, %s36_s10, [#allocation6]  }
   0xf   :  { %s704_s16 = scalar_lea.vmem %s58_s12, 128  ;;  %p709_p6 = scmp.lt.s32.totalorder %s58_s12, %s58_s12 }
  0x10   :  { %p705_p5 = scmp.ne.s32.totalorder %s58_s12, %s704_s16  ;;  %p710_p7 = scmp.lt.s32.totalorder %s704_s16, %s704_s16 }
  0x12   :  { %p711_p8 = por %p710_p7, %p709_p6 }
  0x14   :  { %p712_p9 = pnand %p711_p8, %p705_p5 }
  0x16   :  { %715 = shalt.err (!%p712_p9)
}
  0x17   :  { %60 = dma.hbm_to_vmem [thread:$0]  %s933_s3, 128, %s58_s12, [#allocation9]  }
  0x18   :  { %s828_s19 = smov [#allocation2]   ;;  %s829_s21 = smov [#allocation7]  }
  0x19   :  { %s25_s20 = sshll.u32 %s828_s19, 4  ;;  %s44_s22 = sshll.u32 %s829_s21, 4  ;;  %s26_s20 = int_to_ptr.vmem [resolvable:$true] %s25_s20  ;;  %s45_s22 = int_to_ptr.vmem [resolvable:$true] %s44_s22 }
  0x1a   :  { %s724_s23 = scalar_lea.vmem %s26_s20, 32  ;;  %p729_p11 = scmp.lt.s32.totalorder %s26_s20, %s26_s20 }
  0x1b   :  { %p725_p10 = scmp.ne.s32.totalorder %s26_s20, %s724_s23  ;;  %p730_p12 = scmp.lt.s32.totalorder %s724_s23, %s724_s23 }
  0x1d   :  { %p731_p13 = por %p730_p12, %p729_p11 }
  0x1f   :  { %p732_p0 = pnand %p731_p13, %p725_p10 }
  0x21   :  { %735 = shalt.err (!%p732_p0)
}
  0x22   :  { %28 = dma.hbm_to_vmem [thread:$0]  %s930_s0, 32, %s26_s20, [#allocation3]  }
  0x23   :  { %s744_s25 = scalar_lea.vmem %s45_s22, 512  ;;  %p749_p2 = scmp.lt.s32.totalorder %s45_s22, %s45_s22 }
  0x24   :  { %p745_p1 = scmp.ne.s32.totalorder %s45_s22, %s744_s25  ;;  %p750_p3 = scmp.lt.s32.totalorder %s744_s25, %s744_s25 }
  0x26   :  { %p751_p4 = por %p750_p3, %p749_p2 }
  0x28   :  { %p752_p5 = pnand %p751_p4, %p745_p1 }
  0x2a   :  { %755 = shalt.err (!%p752_p5)
}
  0x2b   :  { %s830_s3 = smov 128   ;;  %s831_s26 = smov 8  }
  0x2c   :  { %50 = dma.hbm_to_vmem [thread:$0]  %s932_s2, 512, %s45_s22, [#allocation6], %s830_s3, %s830_s3, %s831_s26  }
  0x2d   :  { %s832_s29 = smov [#allocation10]   ;;  %s833_s10 = smov [#allocation11]  }
  0x2e   :  { %s68_s30 = sshll.u32 %s832_s29, 4  ;;  %s82_s0 = sshll.u32 %s833_s10, 4  ;;  %s69_s30 = int_to_ptr.vmem [resolvable:$true] %s68_s30  ;;  %s83_s0 = int_to_ptr.vmem [resolvable:$true] %s82_s0 }
  0x2f   :  { %s764_s11 = scalar_lea.vmem %s69_s30, 2048  ;;  %p769_p7 = scmp.lt.s32.totalorder %s69_s30, %s69_s30 }
  0x30   :  { %p765_p6 = scmp.ne.s32.totalorder %s69_s30, %s764_s11  ;;  %p770_p8 = scmp.lt.s32.totalorder %s764_s11, %s764_s11 }
  0x32   :  { %p771_p9 = por %p770_p8, %p769_p7 }
  0x34   :  { %p772_p10 = pnand %p771_p9, %p765_p6 }
  0x36   :  { %775 = shalt.err (!%p772_p10)
}
  0x37   :  { %74 = dma.hbm_to_vmem [thread:$0]  %s935_s5, 2048, %s69_s30, [#allocation9], %s830_s3, %s830_s3, %s831_s26  }
  0x38   :  { %s784_s2 = scalar_lea.vmem %s83_s0, 2048  ;;  %p789_p12 = scmp.lt.s32.totalorder %s83_s0, %s83_s0 }
  0x39   :  { %p785_p11 = scmp.ne.s32.totalorder %s83_s0, %s784_s2  ;;  %p790_p13 = scmp.lt.s32.totalorder %s784_s2, %s784_s2 }
  0x3b   :  { %p791_p0 = por %p790_p13, %p789_p12 }
  0x3d   :  { %p792_p1 = pnand %p791_p0, %p785_p11 }
  0x3f   :  { %795 = shalt.err (!%p792_p1)
}
  0x40   :  { %88 = dma.hbm_to_vmem [thread:$0]  %s937_s7, 2048, %s83_s0, [#allocation12], %s830_s3, %s830_s3, %s831_s26  }
  0x41   :  { %816 = dma.done.wait [#allocation3], 32  }
  0x42   :  { %817 = vsyncadd [#allocation3], 4294967264 }
  0x43   :  { %818 = dma.done.wait [#allocation6], 640  }
  0x44   :  { %819 = vsyncadd [#allocation6], 4294966656 }
  0x45   :  { %820 = dma.done.wait [#allocation9], 2176  }
  0x46   :  { %821 = vsyncadd [#allocation9], 4294965120 }
  0x47   :  { %822 = dma.done.wait [#allocation12], 2048  }
  0x48   :  { %823 = vsyncadd [#allocation12], 4294965248  ;;  %v834_v0 = vmov 0.0   ;;  %vm835_vm0 = vmmov 0   ;;  %v114_v1 = vld [vmem:[#allocation7 + $0x18] sm:$0xff]  ;;  %v113_v2 = vld [vmem:[#allocation7 + $0x10] sm:$0xff]  ;;  %v268_v38 = vlaneseq }
  0x49   :  { %578 = vmatprep.subr.mxu0 %v834_v0  ;;  %586 = vmatprep.mubr.msk.f32.mxu0 %vm835_vm0, %v834_v0  ;;  %vm190_vm1 = vcmask 64512   ;;  %v189_v3 = vld [vmem:[#allocation8] sm:$0xff]  ;;  %v112_v4 = vld [vmem:[#allocation7 + $0x8] sm:$0xff]  ;;  %v110_v5 = vld [vmem:[#allocation5] sm:$0xff]  ;;  %vm115_vm2 = vcmask 261120   ;;  %s837_s19 = smov [#allocation13]  }
  0x4a   :  { %589 = vmatprep.subr.mxu1 %v834_v0  ;;  %591 = vmatprep.mubr.msk.f32.mxu1 %vm835_vm0, %v834_v0  ;;  %v325_v6 = vld [vmem:[#allocation10 + $0x78] sm:$0xff]  ;;  %v324_v7 = vld [vmem:[#allocation10 + $0x70] sm:$0xff]  ;;  %v109_v9 = vld [vmem:[#allocation2] sm:$0x3]  ;;  %v836_v36 = vmov 1966171168  }
  0x4b   :  { %579 = vmatpush3.msra.mxu0 %v114_v1  ;;  %590 = vmatpush3.msra.mxu1 %v189_v3  ;;  %v111_v8 = vld [vmem:[#allocation7] sm:$0xff]  ;;  %v323_v10 = vld [vmem:[#allocation10 + $0x68] sm:$0xff]  ;;  %v322_v11 = vld [vmem:[#allocation10 + $0x60] sm:$0xff]  ;;  %v266_v37 = vunpack.c.l.s4 %v836_v36  ;;  %v269_v40 = vshrl.u32 %v268_v38, 7  ;;  %s515_s20 = sshll.u32 %s837_s19, 4  ;;  %s516_s20 = int_to_ptr.vmem [resolvable:$true] %s515_s20 }
  0x4c   :  { %580 = vmatprep.subr.mxu0 %v834_v0  ;;  %592 = vmatmul.mubr.msk.f32.vlgmr.msra.gmra.mxu1 %vm190_vm1, %v110_v5  ;;  %v321_v12 = vld [vmem:[#allocation10 + $0x58] sm:$0xff]  ;;  %v320_v13 = vld [vmem:[#allocation10 + $0x50] sm:$0xff]  ;;  %v319_v14 = vld [vmem:[#allocation10 + $0x48] sm:$0xff]  ;;  %p801_p3 = scmp.lt.s32.totalorder %s516_s20, %s516_s20 }
  0x4d   :  { %581 = vmatpush3.msra.mxu0 %v113_v2  ;;  %594 = vmatprep.subr.mxu1 %v325_v6  ;;  %v318_v15 = vld [vmem:[#allocation10 + $0x40] sm:$0xff]  ;;  %v317_v16 = vld [vmem:[#allocation10 + $0x38] sm:$0xff]  ;;  %v316_v17 = vld [vmem:[#allocation10 + $0x30] sm:$0xff]  ;;  %v267_v39 = vunpack.c.0.s8 %v266_v37  ;;  %v289_v46 = vsub.s32 0, %v269_v40 }
  0x4e   :  { %582 = vmatprep.subr.mxu0 %v834_v0  ;;  %595 = vmatpush3.msra.mxu1 %v325_v6  ;;  %v315_v18 = vld [vmem:[#allocation10 + $0x28] sm:$0xff]  ;;  %v314_v19 = vld [vmem:[#allocation10 + $0x20] sm:$0xff]  ;;  %v313_v20 = vld [vmem:[#allocation10 + $0x18] sm:$0xff] }
  0x4f   :  { %583 = vmatpush3.msra.mxu0 %v112_v4  ;;  %596 = vmatprep.subr.mxu1 %v324_v7  ;;  %v312_v21 = vld [vmem:[#allocation10 + $0x10] sm:$0xff]  ;;  %v311_v22 = vld [vmem:[#allocation10 + $0x8] sm:$0xff]  ;;  %v310_v23 = vld [vmem:[#allocation10] sm:$0xff]  ;;  %v270_v42 = vsub.s32 %v267_v39, %v269_v40 }
  0x50   :  { %584 = vmatprep.subr.mxu0 %v834_v0  ;;  %597 = vmatpush3.msra.mxu1 %v324_v7  ;;  %v425_v24 = vld [vmem:[#allocation11 + $0x78] sm:$0xff]  ;;  %v424_v25 = vld [vmem:[#allocation11 + $0x70] sm:$0xff]  ;;  %v423_v26 = vld [vmem:[#allocation11 + $0x68] sm:$0xff] }
  0x51   :  { %585 = vmatpush3.msra.mxu0 %v111_v8  ;;  %598 = vmatprep.subr.mxu1 %v323_v10  ;;  %v422_v27 = vld [vmem:[#allocation11 + $0x60] sm:$0xff]  ;;  %v421_v28 = vld [vmem:[#allocation11 + $0x58] sm:$0xff]  ;;  %v420_v29 = vld [vmem:[#allocation11 + $0x50] sm:$0xff] }
  0x52   :  { %587 = vmatmul.mubr.msk.f32.vlgmr.msra.gmra.mxu0 %vm115_vm2, %v109_v9  ;;  %599 = vmatpush3.msra.mxu1 %v323_v10  ;;  %v419_v30 = vld [vmem:[#allocation11 + $0x48] sm:$0xff]  ;;  %v418_v31 = vld [vmem:[#allocation11 + $0x40] sm:$0xff]  ;;  %v417_v32 = vld [vmem:[#allocation11 + $0x38] sm:$0xff] }
  0x53   :  { %600 = vmatprep.subr.mxu1 %v322_v11  ;;  %629 = vmatprep.subr.mxu0 %v425_v24  ;;  %v416_v33 = vld [vmem:[#allocation11 + $0x30] sm:$0xff]  ;;  %v415_v34 = vld [vmem:[#allocation11 + $0x28] sm:$0xff]  ;;  %v414_v35 = vld [vmem:[#allocation11 + $0x20] sm:$0xff] }
  0x54   :  { %601 = vmatpush3.msra.mxu1 %v322_v11  ;;  %630 = vmatpush3.msra.mxu0 %v425_v24  ;;  %v532_v52 = vld [vmem:[%s934_s4] ss:$0 sm:$0xff]  ;;  %v413_v60 = vld [vmem:[#allocation11 + $0x18] sm:$0xff]  ;;  %v412_v61 = vld [vmem:[#allocation11 + $0x10] sm:$0xff] }
  0x55   :  { %602 = vmatprep.subr.mxu1 %v321_v12  ;;  %631 = vmatprep.subr.mxu0 %v424_v25  ;;  %v411_v62 = vld [vmem:[#allocation11 + $0x8] sm:$0xff]  ;;  %v410_v63 = vld [vmem:[#allocation11] sm:$0xff] }
  0x56   :  { %603 = vmatpush3.msra.mxu1 %v321_v12  ;;  %632 = vmatpush3.msra.mxu0 %v424_v25  ;;  %v533_v0 = vld [vmem:[%s936_s6] ss:$0 sm:$0xff]  ;;  %s796_s6 = scalar_lea.vmem %s516_s20, 256 }
  0x57   :  { %604 = vmatprep.subr.mxu1 %v320_v13  ;;  %633 = vmatprep.subr.mxu0 %v423_v26  ;;  %v534_v7 = vld [vmem:[%s938_s8] ss:$0 sm:$0xff]  ;;  %p797_p2 = scmp.ne.s32.totalorder %s516_s20, %s796_s6  ;;  %p802_p4 = scmp.lt.s32.totalorder %s796_s6, %s796_s6 }
  0x58   :  { %605 = vmatpush3.msra.mxu1 %v320_v13  ;;  %634 = vmatpush3.msra.mxu0 %v423_v26 }
  0x59   :  { %606 = vmatprep.subr.mxu1 %v319_v14  ;;  %635 = vmatprep.subr.mxu0 %v422_v27  ;;  %p803_p5 = por %p802_p4, %p801_p3 }
  0x5a   :  { %607 = vmatpush3.msra.mxu1 %v319_v14  ;;  %636 = vmatpush3.msra.mxu0 %v422_v27 }
  0x5b   :  { %608 = vmatprep.subr.mxu1 %v318_v15  ;;  %637 = vmatprep.subr.mxu0 %v421_v28  ;;  %p804_p6 = pnand %p803_p5, %p797_p2 }
  0x5c   :  { %609 = vmatpush3.msra.mxu1 %v318_v15  ;;  %638 = vmatpush3.msra.mxu0 %v421_v28 }
  0x5d   :  { %610 = vmatprep.subr.mxu1 %v317_v16  ;;  %639 = vmatprep.subr.mxu0 %v420_v29 }
  0x5e   :  { %611 = vmatpush3.msra.mxu1 %v317_v16  ;;  %640 = vmatpush3.msra.mxu0 %v420_v29 }
  0x5f   :  { %612 = vmatprep.subr.mxu1 %v316_v17  ;;  %641 = vmatprep.subr.mxu0 %v419_v30 }
  0x60   :  { %613 = vmatpush3.msra.mxu1 %v316_v17  ;;  %642 = vmatpush3.msra.mxu0 %v419_v30 }
  0x61   :  { %614 = vmatprep.subr.mxu1 %v315_v18  ;;  %643 = vmatprep.subr.mxu0 %v418_v31 }
  0x62   :  { %615 = vmatpush3.msra.mxu1 %v315_v18  ;;  %644 = vmatpush3.msra.mxu0 %v418_v31 }
  0x63   :  { %616 = vmatprep.subr.mxu1 %v314_v19  ;;  %645 = vmatprep.subr.mxu0 %v417_v32 }
  0x64   :  { %617 = vmatpush3.msra.mxu1 %v314_v19  ;;  %646 = vmatpush3.msra.mxu0 %v417_v32 }
  0x65   :  { %618 = vmatprep.subr.mxu1 %v313_v20  ;;  %647 = vmatprep.subr.mxu0 %v416_v33 }
  0x66   :  { %619 = vmatpush3.msra.mxu1 %v313_v20  ;;  %648 = vmatpush3.msra.mxu0 %v416_v33 }
  0x67   :  { %620 = vmatprep.subr.mxu1 %v312_v21  ;;  %649 = vmatprep.subr.mxu0 %v415_v34 }
  0x68   :  { %621 = vmatpush3.msra.mxu1 %v312_v21  ;;  %650 = vmatpush3.msra.mxu0 %v415_v34 }
  0x69   :  { %622 = vmatprep.subr.mxu1 %v311_v22  ;;  %651 = vmatprep.subr.mxu0 %v414_v35 }
  0x6a   :  { %623 = vmatpush3.msra.mxu1 %v311_v22  ;;  %652 = vmatpush3.msra.mxu0 %v414_v35 }
  0x6b   :  { %624 = vmatprep.subr.mxu1 %v310_v23  ;;  %653 = vmatprep.subr.mxu0 %v413_v60 }
  0x6c   :  { %625 = vmatpush3.msra.mxu1 %v310_v23  ;;  %654 = vmatpush3.msra.mxu0 %v413_v60 }
  0x6d   :  { %655 = vmatprep.subr.mxu0 %v412_v61 }
  0x6e   :  { %656 = vmatpush3.msra.mxu0 %v412_v61 }
  0x6f   :  { %657 = vmatprep.subr.mxu0 %v411_v62 }
  0x70   :  { %658 = vmatpush3.msra.mxu0 %v411_v62 }
  0x71   :  { %659 = vmatprep.subr.mxu0 %v410_v63 }
  0x72   :  { %660 = vmatpush3.msra.mxu0 %v410_v63 }
 0x10c   :  { %v260_v41 = vpop.f32.mrf.mxu1 }
 0x10e   :  { %v593_v43 = vpop.f32.mrf.mxu1 }
 0x112   :  { %v185_v44 = vpop.f32.mrf.mxu0 }
 0x113   :  { %v271_v45 = vrot.slane %v185_v44, %v270_v42 }
 0x114   :  { %v588_v47 = vpop.f32.mrf.mxu0 }
 0x115   :  { %v272_v48 = vcombine.high %v271_v45, %v271_v45  ;;  %v279_v49 = vrot.slane %v271_v45, %v270_v42 }
 0x117   :  { %v286_v50 = vrot.slane %v272_v48, %v270_v42  ;;  %v290_v51 = vrot.slane %v279_v49, %v289_v46 }
 0x119   :  { %v294_v53 = vrot.slane %v286_v50, %v289_v46  ;;  %v297_v54 = vadd.f32 %v290_v51, %v260_v41 }
 0x11b   :  { %v298_v55 = vadd.f32 %v294_v53, %v260_v41  ;;  %v306_v56 = vadd.f32 %v532_v52, %v297_v54 }
 0x11d   :  { %v307_v57 = vadd.f32 %v532_v52, %v298_v55  ;;  %v308_v58 = vmax.f32 %v306_v56, 0.0 }
 0x11f   :  { %v309_v59 = vmax.f32 %v307_v57, 0.0  ;;  %626 = vmatprep.mubr.f32.mxu1 %v308_v58 }
 0x121   :  { %627 = vmatmul.mubr.f32.vlgmr.msra.gmra.mxu1 %v309_v59 }
 0x1e1   :  { %v628_v1 = vpop.f32.mrf.mxu1 }
 0x1e2   :  { %v405_v2 = vadd.f32 %v628_v1, %v533_v0 }
 0x1e3   :  { %v399_v3 = vpop.f32.mrf.mxu1 }
 0x1e4   :  { %v400_v4 = vadd.f32 %v533_v0, %v399_v3  ;;  %v409_v6 = vmax.f32 %v405_v2, 0.0 }
 0x1e6   :  { %v408_v5 = vmax.f32 %v400_v4, 0.0 }
 0x1e8   :  { %661 = vmatprep.mubr.f32.mxu0 %v408_v5 }
 0x1e9   :  { %662 = vmatmul.mubr.f32.vlgmr.msra.gmra.mxu0 %v409_v6 }
 0x2a9   :  { %v663_v8 = vpop.f32.mrf.mxu0 }
 0x2aa   :  { %v505_v9 = vadd.f32 %v663_v8, %v534_v7 }
 0x2ab   :  { %v499_v10 = vpop.f32.mrf.mxu0 }
 0x2ac   :  { %509 = vst [vmem:[#allocation13 + $0x8] sm:$0xff] %v505_v9  ;;  %v500_v11 = vadd.f32 %v534_v7, %v499_v10 }
 0x2ae   :  { %508 = vst [vmem:[#allocation13] sm:$0xff] %v500_v11 }
 0x2af   :  { %807 = shalt.err (!%p804_p6)
}
 0x2b0   :  { %521 = dma.vmem_to_hbm [thread:$0]  %s516_s20, 256, %s939_s9, [#allocation4], %s830_s3, %s830_s3, %s831_s26  }
 0x2b1   :  { %824 = dma.done.wait [#allocation4], 256  }
 0x2b2   :  { %825 = vsyncadd [#allocation4], 4294967040 }
 0x2b3   :  { %525 = vsyncpa [#allocation3], 1 }
 0x2b4   :  { %526 = vsyncpa [#allocation6], 1 }
 0x2b5   :  { %527 = vsyncpa [#allocation9], 1 }
 0x2b6   :  { %528 = vsyncpa [#allocation12], 1 }
 0x2b7   :  { %529 = vsyncpa [#allocation4], 1 }

</bundles_post_ra>
